<compile_context>
chip_gen: v5e
topology: v5e:2x2
jax: 0.10.0
libtpu: 0.0.40
codegen_flags: <defaults>
</compile_context>

<pallas_src>
import functools

import jax
import jax.numpy as jnp
from jax.experimental import pallas as pl
from jax.experimental.pallas import tpu as pltpu

_SUBLANE = 8
_LANE = 128


def _round_up(x, m):
    return (x + m - 1) // m * m


def _vmem_budgets():
    """(tile-footprint budget, scoped vmem_limit_bytes) per TPU generation."""
    try:
        phys = int(pltpu.get_tpu_info().vmem_capacity_bytes)
    except Exception:
        phys = 64 * 1024 * 1024          # conservative: v7x per-TensorCore VMEM
    # ~half of physical for the pipelined tiles + f32 temporaries, scoped limit
    # comfortably above that but below physical:
    #   v7x (64 MiB):   32 MiB tiles, 48 MiB scoped limit
    #   v5e/v6e (128):  48 MiB tiles, 64 MiB scoped limit
    total_budget = min(phys // 2, 48 * 1024 * 1024)
    vmem_limit = min(phys * 3 // 4, total_budget + 16 * 1024 * 1024)
    return total_budget, vmem_limit


def _sigmoid_loss_kernel(x_ref, t_ref, o_ref, acc_ref, *,
                         n_rows, n_cols, tm, tc, mask_rows, mask_cols):
    i = pl.program_id(0)          # row-tile index   ("parallel": megacore)
    j = pl.program_id(1)          # class-tile index ("arbitrary": reduction)

    # Fresh accumulator for every row tile (required for the parallel row axis).
    @pl.when(j == 0)
    def _():
        acc_ref[...] = jnp.zeros_like(acc_ref)

    x = x_ref[...].astype(jnp.float32)            # (tm, tc) logits tile
    t_idx = t_ref[...]                            # (tm, 1)  int32 class ids

    # One-hot as a select: local lane index vs. (target - class-tile offset).
    col = jax.lax.broadcasted_iota(jnp.int32, (tm, tc), 1)
    xt = jnp.where(col == (t_idx - j * tc), x, 0.0)

    # Numerically stable BCE-with-logits.
    # TODO(synk): optional bf16 elementwise path for bf16 inputs on v6e/v7x
    # (packed EUP/VPU); kept f32 so the same kernel is also correct on v5e.
    loss = jnp.maximum(x, 0.0) - xt + jnp.log1p(jnp.exp(-jnp.abs(x)))

    # Zero out-of-range lanes of ragged edge blocks (garbage, possibly NaN/Inf).
    # TODO(synk): only if a bundle dump shows VALU binding, gate these masks
    # with pl.when(i/j == last) so interior tiles skip the compares+selects.
    if mask_rows or mask_cols:
        valid = None
        if mask_rows:
            row = jax.lax.broadcasted_iota(jnp.int32, (tm, 1), 0)
            valid = row < (n_rows - i * tm)
        if mask_cols:
            cmask = col < (n_cols - j * tc)
            valid = cmask if valid is None else jnp.logical_and(valid, cmask)
        loss = jnp.where(valid, loss, 0.0)

    # Partial accumulation into a vreg-shaped scratch: summing the sublane
    # groups is plain elementwise VALU adds (no per-step cross-lane reduce).
    acc_ref[...] += loss.reshape(tm // _SUBLANE, _SUBLANE, tc).sum(axis=0)

    # Per-row-tile finalize: one cross-lane reduce, splatted into a lane-dense
    # (8, 128) output block (unmasked stores; the wrapper sums the partials).
    @pl.when(j == pl.num_programs(1) - 1)
    def _():
        o_ref[...] = (jnp.sum(acc_ref[...])
                      + jnp.zeros((1, _SUBLANE, _LANE), jnp.float32))


def sigmoid_loss(inputs, targets, *, row_tile=None, class_tile=None):
    """Pallas equivalent of SigmoidLoss().forward(inputs, targets)."""
    N, C = inputs.shape
    itemsize = jnp.dtype(inputs.dtype).itemsize
    total_budget, vmem_limit = _vmem_budgets()

    # Per-element VMEM cost: double-buffered native-dtype input tile plus ~3x
    # f32 for the upcast / loss intermediates the compiler may materialize.
    bytes_per_elem = 2 * itemsize + 3 * 4

    # Class-dim tile: whole C unless even a 256-row tile would blow the budget.
    if class_tile is not None:
        tc = class_tile
    elif 256 * C * bytes_per_elem <= total_budget:
        tc = C
    else:
        tc = 4096                               # multiple of 128 lanes
    assert tc == C or tc % _LANE == 0

    # Row tile: as many rows as fit the budget (multiple of 8, no hard cap).
    if row_tile is not None:
        tm = row_tile
    else:
        max_tm = max(_SUBLANE,
                     (total_budget // (tc * bytes_per_elem))
                     // _SUBLANE * _SUBLANE)
        tm = min(_round_up(N, _SUBLANE), max_tm)
    assert tm % _SUBLANE == 0

    grid = (pl.cdiv(N, tm), pl.cdiv(C, tc))
    t2 = targets.astype(jnp.int32).reshape(N, 1)

    kernel = functools.partial(
        _sigmoid_loss_kernel,
        n_rows=N, n_cols=C, tm=tm, tc=tc,
        mask_rows=(N % tm != 0), mask_cols=(C % tc != 0))

    partials = pl.pallas_call(
        kernel,
        out_shape=jax.ShapeDtypeStruct((grid[0], _SUBLANE, _LANE), jnp.float32),
        grid=grid,
        in_specs=[
            pl.BlockSpec((tm, tc), lambda i, j: (i, j)),   # logits tile
            pl.BlockSpec((tm, 1), lambda i, j: (i, 0)),    # target indices
        ],
        out_specs=pl.BlockSpec((1, _SUBLANE, _LANE), lambda i, j: (i, 0, 0)),
        scratch_shapes=[pltpu.VMEM((_SUBLANE, tc), jnp.float32)],
        # Row tiles are independent -> "parallel" (sharded across the two
        # TensorCores on v7x; neutral on single-TC v5e/v6e). The class axis
        # reduces into acc_ref, so it stays "arbitrary".
        compiler_params=pltpu.CompilerParams(
            dimension_semantics=("parallel", "arbitrary"),
            vmem_limit_bytes=vmem_limit),
    )(inputs, t2)

    return jnp.sum(partials[:, 0, 0]) * (1.0 / float(N * C))


def _reference(inputs, targets):
    x = inputs.astype(jnp.float32)
    onehot = jax.nn.one_hot(targets, x.shape[1], dtype=jnp.float32)
    loss = jnp.maximum(x, 0.0) - x * onehot + jnp.log1p(jnp.exp(-jnp.abs(x)))
    return jnp.mean(loss)


if __name__ == "__main__":
    key = jax.random.PRNGKey(0)
    k1, k2, k3, k4, k5, k6 = jax.random.split(key, 6)

    # Case 1: aligned small shapes, f32 logits (batch=16, num_classes=128).
    n1, c1 = 16, 128
    x1 = jax.random.normal(k1, (n1, c1), dtype=jnp.float32)
    t1 = jax.random.randint(k2, (n1,), 0, c1, dtype=jnp.int32)
    out1 = jax.block_until_ready(sigmoid_loss(x1, t1))
    ref1 = jax.block_until_ready(_reference(x1, t1))
    assert jnp.allclose(out1, ref1, rtol=1e-5, atol=1e-6), (out1, ref1)

    # Case 2: ragged batch + non-128 class count, bf16 logits (native dtype).
    n2, c2 = 13, 40
    x2 = jax.random.normal(k3, (n2, c2), dtype=jnp.float32).astype(jnp.bfloat16)
    t2 = jax.random.randint(k4, (n2,), 0, c2, dtype=jnp.int32)
    out2 = jax.block_until_ready(sigmoid_loss(x2, t2))
    ref2 = jax.block_until_ready(_reference(x2, t2))
    assert jnp.allclose(out2, ref2, rtol=1e-4, atol=1e-5), (out2, ref2)

    # Case 3: forced small tiles -> multi-tile grid with ragged edges in both
    # dims; exercises the unpadded edge masks, the parallel row-tile axis and
    # the per-row-tile partial-sum outputs.
    n3, c3 = 50, 300
    x3 = jax.random.normal(k5, (n3, c3), dtype=jnp.float32)
    t3 = jax.random.randint(k6, (n3,), 0, c3, dtype=jnp.int32)
    out3 = jax.block_until_ready(
        sigmoid_loss(x3, t3, row_tile=16, class_tile=128))
    ref3 = jax.block_until_ready(_reference(x3, t3))
    assert jnp.allclose(out3, ref3, rtol=1e-5, atol=1e-6), (out3, ref3)

    print("KERNEL_OK")
</pallas_src>

<mosaic_0001>
module attributes {stable_mosaic.version = 11 : i64} {
  func.func @_sigmoid_loss_kernel(%arg0: i32, %arg1: i32, %arg2: memref<16x128xf32, #tpu.memory_space<vmem>>, %arg3: memref<16x1xi32, #tpu.memory_space<vmem>>, %arg4: memref<1x8x128xf32, #tpu.memory_space<vmem>>, %arg5: memref<8x128xf32, #tpu.memory_space<vmem>>) attributes {dimension_semantics = [#tpu.dimension_semantics<parallel>, #tpu.dimension_semantics<arbitrary>], iteration_bounds = array<i64: 1, 1>, scalar_prefetch = 0 : i64, scratch_operands = 1 : i64, tpu.core_type = #tpu.core_type<tc>, window_params = [{transform_indices = @transform_0, window_bounds = array<i64: 16, 128>}, {transform_indices = @transform_1, window_bounds = array<i64: 16, 1>}, {transform_indices = @transform_2, window_bounds = array<i64: 1, 8, 128>}]} {
    %c0_i32 = arith.constant 0 : i32
    %0 = arith.cmpi eq, %arg1, %c0_i32 : i32
    %1 = arith.extui %0 : i1 to i32
    %c0_i32_0 = arith.constant 0 : i32
    %2 = arith.cmpi ne, %1, %c0_i32_0 : i32
    scf.if %2 {
      %cst_13 = arith.constant 0.000000e+00 : f32
      %30 = vector.broadcast %cst_13 : f32 to vector<8x128xf32>
      %c0_14 = arith.constant 0 : index
      %c0_15 = arith.constant 0 : index
      %31 = vector.load %arg5[%c0_14, %c0_15] : memref<8x128xf32, #tpu.memory_space<vmem>>, vector<8x128xf32>
      tpu.vector_store %arg5[%c0_14, %c0_15], %30 {strides = array<i32>} : memref<8x128xf32, #tpu.memory_space<vmem>>, vector<8x128xf32>,
    } else {
    }
    %c0 = arith.constant 0 : index
    %c0_1 = arith.constant 0 : index
    %3 = vector.load %arg2[%c0, %c0_1] : memref<16x128xf32, #tpu.memory_space<vmem>>, vector<16x128xf32>
    %c0_2 = arith.constant 0 : index
    %c0_3 = arith.constant 0 : index
    %4 = vector.load %arg3[%c0_2, %c0_3] : memref<16x1xi32, #tpu.memory_space<vmem>>, vector<16x1xi32>
    %5 = tpu.iota {dimensions = array<i32: 1>} : vector<16x128xi32>
    %c128_i32 = arith.constant 128 : i32
    %6 = arith.muli %arg1, %c128_i32 : i32
    %7 = vector.broadcast %6 : i32 to vector<16x1xi32>
    %8 = arith.subi %4, %7 : vector<16x1xi32>
    %9 = vector.broadcast %8 : vector<16x1xi32> to vector<16x128xi32>
    %10 = arith.cmpi eq, %5, %9 : vector<16x128xi32>
    %cst = arith.constant 0.000000e+00 : f32
    %11 = vector.broadcast %cst : f32 to vector<16x128xf32>
    %12 = arith.select %10, %3, %11 : vector<16x128xi1>, vector<16x128xf32>
    %cst_4 = arith.constant 0.000000e+00 : f32
    %13 = vector.broadcast %cst_4 : f32 to vector<16x128xf32>
    %14 = arith.maximumf %3, %13 : vector<16x128xf32>
    %15 = arith.subf %14, %12 : vector<16x128xf32>
    %16 = math.absf %3 : vector<16x128xf32>
    %cst_5 = arith.constant 0.000000e+00 : f32
    %17 = vector.broadcast %cst_5 : f32 to vector<16x128xf32>
    %18 = arith.subf %17, %16 : vector<16x128xf32>
    %19 = math.exp %18 : vector<16x128xf32>
    %20 = math.log1p %19 : vector<16x128xf32>
    %21 = arith.addf %15, %20 : vector<16x128xf32>
    %c0_6 = arith.constant 0 : index
    %c0_7 = arith.constant 0 : index
    %22 = vector.load %arg5[%c0_6, %c0_7] : memref<8x128xf32, #tpu.memory_space<vmem>>, vector<8x128xf32>
    %23 = vector.shape_cast %21 : vector<16x128xf32> to vector<2x8x128xf32>
    %cst_8 = arith.constant dense<0.000000e+00> : vector<8x128xf32>
    %24 = vector.multi_reduction <add>, %23, %cst_8 [0] : vector<2x8x128xf32> to vector<8x128xf32>
    %25 = arith.addf %22, %24 : vector<8x128xf32>
    %c0_9 = arith.constant 0 : index
    %c0_10 = arith.constant 0 : index
    %26 = vector.load %arg5[%c0_9, %c0_10] : memref<8x128xf32, #tpu.memory_space<vmem>>, vector<8x128xf32>
    tpu.vector_store %arg5[%c0_9, %c0_10], %25 {strides = array<i32>} : memref<8x128xf32, #tpu.memory_space<vmem>>, vector<8x128xf32>,
    %c0_i32_11 = arith.constant 0 : i32
    %27 = arith.cmpi eq, %arg1, %c0_i32_11 : i32
    %28 = arith.extui %27 : i1 to i32
    %c0_i32_12 = arith.constant 0 : i32
    %29 = arith.cmpi ne, %28, %c0_i32_12 : i32
    scf.if %29 {
      %c0_13 = arith.constant 0 : index
      %c0_14 = arith.constant 0 : index
      %30 = vector.load %arg5[%c0_13, %c0_14] : memref<8x128xf32, #tpu.memory_space<vmem>>, vector<8x128xf32>
      %31 = vector.shape_cast %30 : vector<8x128xf32> to vector<1x8x128xf32>
      %cst_15 = arith.constant dense<0.000000e+00> : vector<1xf32>
      %32 = vector.multi_reduction <add>, %31, %cst_15 [1, 2] : vector<1x8x128xf32> to vector<1xf32>
      %33 = vector.shape_cast %32 : vector<1xf32> to vector<1x1x1xf32>
      %34 = vector.extract %33[0, 0, 0] : f32 from vector<1x1x1xf32>
      %cst_16 = arith.constant 0.000000e+00 : f32
      %35 = vector.broadcast %cst_16 : f32 to vector<1x8x128xf32>
      %36 = vector.broadcast %34 : f32 to vector<1x8x128xf32>
      %37 = arith.addf %36, %35 : vector<1x8x128xf32>
      %c0_17 = arith.constant 0 : index
      %c0_18 = arith.constant 0 : index
      %c0_19 = arith.constant 0 : index
      %38 = vector.load %arg4[%c0_17, %c0_18, %c0_19] : memref<1x8x128xf32, #tpu.memory_space<vmem>>, vector<1x8x128xf32>
      tpu.vector_store %arg4[%c0_17, %c0_18, %c0_19], %37 {strides = array<i32>} : memref<1x8x128xf32, #tpu.memory_space<vmem>>, vector<1x8x128xf32>,
    } else {
    }
    return
  }
  func.func @transform_0(%arg0: i32, %arg1: i32) -> (i32, i32) {
    %c0_i32 = arith.constant 0 : i32
    return %arg0, %arg1 : i32, i32
  }
  func.func @transform_1(%arg0: i32, %arg1: i32) -> (i32, i32) {
    %c0_i32 = arith.constant 0 : i32
    %c0_i32_0 = arith.constant 0 : i32
    return %arg0, %c0_i32 : i32, i32
  }
  func.func @transform_2(%arg0: i32, %arg1: i32) -> (i32, i32, i32) {
    %c0_i32 = arith.constant 0 : i32
    %c0_i32_0 = arith.constant 0 : i32
    %c0_i32_1 = arith.constant 0 : i32
    return %arg0, %c0_i32, %c0_i32_0 : i32, i32, i32
  }
}

</mosaic_0001>

<bundles_post_ra>
// kernel: tpu_custom_call.1
= control target key start
LH: loop header
LB: loop body
LE: loop exit
PB: predicated region body
PF: predicated region fallthrough
CT: control target
= control target key end

     0   :  { %s176_s0 = inlined_call_operand.vmem [shape: f32[16,128], index: 0, kind: input, shape index: {}]   ;;  %s177_s1 = inlined_call_operand.vmem [shape: s32[16,1], index: 1, kind: input, shape index: {}]   ;;  %s178_s2 = inlined_call_operand.hbm [shape: f32[1,8,128], index: 2, kind: output, shape index: {}]  }
   0x1   :  { %v19_v0 = vld [vmem:[%s177_s1] sm:$0xff] }
   0x2   :  { %7 = vsyncpa [#allocation4], 0  ;;  %v144_v1 = vmov 0   ;;  %v20_v2 = vld [vmem:[%s177_s1 + $0x8] sm:$0xff]  ;;  %v17_v3 = vld [vmem:[%s176_s0] sm:$0xff]  ;;  %v21_v15 = vlaneseq  ;;  %s96_s19 = sshll.u32 %s178_s2, 4  ;;  %s97_s19 = int_to_ptr.hbm [resolvable:$true] %s96_s19 }
   0x3   :  { %109 = vset.pattern.permute.xlu0 %v144_v1  ;;  %v18_v4 = vld [vmem:[%s176_s0 + $0x8] sm:$0xff]  ;;  %v41_v5 = vand.u32 2147483647, %v17_v3  ;;  %v37_v26 = vmax.f32 %v17_v3, 0.0  ;;  %s145_s0 = smov [#allocation3]  }
   0x4   :  { %28 = vperm.xlu0 %109, %v19_v0   ;;  %v42_v6 = vand.u32 2147483647, %v18_v4  ;;  %v22_v18 = vand.u32 127, %v21_v15  ;;  %v38_v32 = vmax.f32 %v18_v4, 0.0  ;;  %s94_s1 = sshll.u32 %s145_s0, 4  ;;  %s95_s1 = int_to_ptr.vmem [resolvable:$true] %s94_s1 }
   0x5   :  { %v43_v7 = vsub.f32 0.0, %v41_v5 }
   0x6   :  { %v44_v8 = vsub.f32 0.0, %v42_v6 }
   0x7   :  { %v45_v9 = vmul.f32 1.442695, %v43_v7 }
   0x8   :  { %v47_v10 = vmul.f32 1.442695, %v44_v8 }
   0x9   :  { %110 = vpow2.f32 %v45_v9 }
   0xa   :  { %112 = vpow2.f32 %v47_v10 }
   0xc   :  { %31 = vperm.xlu0 %109, %v20_v2  }
   0xf   :  { %v111_v11 = vpop.eup %110 }
  0x10   :  { %v113_v12 = vpop.eup %112  ;;  %v49_v13 = vadd.f32 1.0, %v111_v11  ;;  %v52_v16 = vmul.f32 -0.5, %v111_v11  ;;  %v55_v24 = vand.u32 2147483647, %v111_v11 }
  0x11   :  { %v58_v14 = vadd.f32 1.0, %v113_v12  ;;  %v61_v17 = vmul.f32 -0.5, %v113_v12  ;;  %v64_v25 = vand.u32 2147483647, %v113_v12 }
  0x12   :  { %114 = vlog2.f32 %v49_v13  ;;  %v53_v21 = vadd.f32 1.0, %v52_v16  ;;  %vm56_vm1 = vcmp.lt.f32.partialorder %v55_v24, 0.0004427343 }
  0x13   :  { %116 = vlog2.f32 %v58_v14  ;;  %v62_v22 = vadd.f32 1.0, %v61_v17  ;;  %vm65_vm2 = vcmp.lt.f32.partialorder %v64_v25, 0.0004427343 }
  0x14   :  { %v54_v29 = vmul.f32 %v111_v11, %v53_v21 }
  0x15   :  { %v63_v31 = vmul.f32 %v113_v12, %v62_v22 }
  0x18   :  { %v115_v20 = vpop.eup %114 }
  0x19   :  { %v117_v23 = vpop.eup %116  ;;  %v51_v27 = vmul.f32 0.6931472, %v115_v20 }
  0x1a   :  { %v60_v30 = vmul.f32 0.6931472, %v117_v23 }
  0x1b   :  { %v57_v36 = vsel %vm56_vm1, %v54_v29, %v51_v27 }
  0x1c   :  { %v66_v37 = vsel %vm65_vm2, %v63_v31, %v60_v30 }
  0x76   :  { %v29_v19 = vpop.permute.xlu0 %28 }
  0x77   :  { %vm33_vm0 = vcmp.eq.s32.totalorder %v22_v18, %v29_v19 }
  0x78   :  { %v35_v28 = vsel %vm33_vm0, %v17_v3, 0.0 }
  0x79   :  { %v39_v34 = vsub.f32 %v37_v26, %v35_v28 }
  0x7b   :  { %v67_v39 = vadd.f32 %v57_v36, %v39_v34 }
  0x7e   :  { %v32_v33 = vpop.permute.xlu0 %31 }
  0x7f   :  { %vm34_vm3 = vcmp.eq.s32.totalorder %v22_v18, %v32_v33 }
  0x80   :  { %v36_v35 = vsel %vm34_vm3, %v18_v4, 0.0 }
  0x81   :  { %v40_v38 = vsub.f32 %v38_v32, %v36_v35 }
  0x83   :  { %v68_v40 = vadd.f32 %v66_v37, %v40_v38 }
  0x85   :  { %v70_v41 = vadd.f32 %v68_v40, %v67_v39 }
  0x87   :  { %77 = vadd.xlane.f32.xlu1 %v70_v41 }
  0xfa   :  { %v78_v42 = vpop.xlane.xlu1 %77 }
  0xfb   :  { %v79_v43 = vrot.slane %v78_v42, 4 }
  0xfd   :  { %v80_v44 = vadd.f32 %v79_v43, %v78_v42 }
  0xff   :  { %v81_v45 = vrot.slane %v80_v44, 2 }
 0x101   :  { %v82_v46 = vadd.f32 %v81_v45, %v80_v44 }
 0x103   :  { %v83_v47 = vrot.slane %v82_v46, 1 }
 0x105   :  { %v84_v48 = vadd.f32 %v83_v47, %v82_v46 }
 0x107   :  { %105 = vpush %v84_v48 }
 0x138   :  { %s106_s20 = spop %105 }
 0x139   :  { %v86_v49 = vstv %s106_s20 }
 0x13a   :  { %88 = vst [vmem:[#allocation3] sm:$0xff] %v86_v49 }
 0x13b   :  { %99 = dma.vmem_to_hbm [thread:$0]  %s95_s1, 128, %s97_s19, [#allocation4]  }
 0x13c   :  { %142 = dma.done.wait [#allocation4], 128  }
 0x13d   :  { %143 = vsyncadd [#allocation4], 4294967168 }
 0x13e   :  { %104 = vsyncpa [#allocation4], 1 }

</bundles_post_ra>
